<compile_context>
chip_gen: v7x
topology: tpu7x:2x2x1
jax: 0.10.0
libtpu: 0.0.40
codegen_flags: <defaults>
</compile_context>

<pallas_src>
import functools

import numpy as np
import jax
import jax.numpy as jnp
from jax.experimental import pallas as pl
from jax.experimental.pallas import tpu as pltpu


def _round_up(x, m):
    return ((int(x) + m - 1) // m) * m


def _device_kind():
    try:
        return jax.devices()[0].device_kind.lower()
    except Exception:
        return ""


def _vmem_limit_bytes():
    cap = None
    try:
        cap = int(getattr(pltpu.get_tpu_info(), "vmem_capacity_bytes"))
    except Exception:
        cap = None
    if not cap:
        cap = 64 << 20  # conservative: v7x per-TC physical VMEM
    # 56 MiB on >=64 MiB chips: above every generation's scoped default, below
    # v7x's 64 MiB physical.
    return max(16 << 20, min(cap, 64 << 20) - (8 << 20))


def _default_fuse_gather(N, D):
    kind = _device_kind()
    if "v5" in kind:       # v5e: weak MXU/HBM ratio -> streaming wins early
        n_cap = 384
    elif "v7" in kind:     # v7x: 3.2 TB/s HBM -> streaming wins earlier than v6e
        n_cap = 512
    else:                  # v6e and default
        n_cap = 1024
    return (N <= n_cap) and (N <= 4 * D) and (N * D * 2 <= (4 << 20))


def _finalize(inter, nnzr, nnzc, deg, score_ref, mask_ref, *, threshold,
              allow_singleton):
    # inter/nnzr/nnzc: (1, tE) f32; deg: (1, tE) int32.
    union = nnzr + nnzc - inter
    score = inter / (union + 1e-7)        # exact divide (threshold comparison)
    cond = score <= threshold
    if not allow_singleton:
        cond = jnp.logical_and(cond, deg > 1)
    score_ref[...] = score
    mask_ref[...] = cond.astype(jnp.int8)


def _fused_gather_kernel(maskT_ref, row_ref, col_ref, nnzr_ref, nnzc_ref, deg_ref,
                         score_ref, mask_ref, *, threshold, allow_singleton):
    # maskT_ref: (D, N) bf16 nonzero pattern of feat; constant block index ->
    # stays resident in VMEM across all grid steps.
    maskT = maskT_ref[...]
    n = maskT_ref.shape[1]
    te = row_ref.shape[1]
    # (N, 1) iota vs (1, 2*tE) concatenated row|col indices -> one bf16 one-hot.
    node_ids = jax.lax.broadcasted_iota(jnp.int32, (n, 1), 0)
    rc = jnp.concatenate([row_ref[...], col_ref[...]], axis=1)     # (1, 2*tE)
    oh = (node_ids == rc).astype(maskT.dtype)                      # (N, 2*tE) bf16
    # Single MXU gather-by-matmul: columns [0:tE) are feat[row], [tE:2tE) feat[col]
    # nonzero patterns (exact 0/1 values, accumulated in f32).
    g = jnp.dot(maskT, oh, preferred_element_type=jnp.float32)     # (D, 2*tE)
    inter = jnp.sum(g[:, :te] * g[:, te:], axis=0, keepdims=True)  # (1, tE)
    _finalize(inter, nnzr_ref[...], nnzc_ref[...], deg_ref[...],
              score_ref, mask_ref, threshold=threshold,
              allow_singleton=allow_singleton)


def _pregathered_kernel(a_ref, b_ref, nnzr_ref, nnzc_ref, deg_ref,
                        score_ref, mask_ref, *, threshold, allow_singleton):
    # a_ref/b_ref: (D, tE) int8 nonzero masks of the two edge endpoints.
    a = a_ref[...].astype(jnp.float32)
    b = b_ref[...].astype(jnp.float32)
    inter = jnp.sum(a * b, axis=0, keepdims=True)                  # (1, tE)
    _finalize(inter, nnzr_ref[...], nnzc_ref[...], deg_ref[...],
              score_ref, mask_ref, threshold=threshold,
              allow_singleton=allow_singleton)


def jaccard_purification(feat, row, col, *, threshold=0.0, allow_singleton=False,
                         block_edges=1024, fuse_gather=None):
    """Returns (score[E], remove_mask[E]) matching the torch forward semantics.

    Note: intersection is computed on the nonzero masks (== count_nonzero(A*B)
    unless a product of two nonzero features underflows to zero, which cannot
    happen for the binary / sparse features this defense targets).
    """
    E = int(row.shape[0])
    N, D = int(feat.shape[0]), int(feat.shape[1])
    if E == 0:
        return jnp.zeros((0,), jnp.float32), jnp.zeros((0,), bool)

    row = row.astype(jnp.int32)
    col = col.astype(jnp.int32)

    if fuse_gather is None:
        fuse_gather = _default_fuse_gather(N, D)

    # --- glue computed once in XLA (scatter-add / per-node reductions) ---
    deg = jnp.zeros((N,), jnp.int32).at[col].add(1)             # g.in_degrees()
    nnz = jnp.count_nonzero(feat, axis=1).astype(jnp.float32)   # per-node nnz

    # --- edge tile (lane axis), multiple of 128 ---
    tE = max(128, _round_up(int(block_edges), 128))
    if not fuse_gather:
        # Keep 2 inputs x 2 buffers x D x tE int8 tiles within a VMEM budget.
        budget = 16 << 20
        tE = min(tE, max(128, (budget // max(4 * D, 1)) // 128 * 128))
    # Do not tile past the (padded) edge count; keep >= 2 grid steps when
    # possible so both v7x TensorCores get work.
    tE = min(tE, _round_up(E, 128))
    if E > 128 and _round_up(E, 128) <= tE:
        tE = max(128, _round_up((E + 1) // 2, 128))

    pad = (-E) % tE
    Ep = E + pad
    grid = (Ep // tE,)

    # Pad only O(E) per-edge arrays; padded tail is sliced off before return.
    row_p = jnp.pad(row, (0, pad))
    col_p = jnp.pad(col, (0, pad))
    row2 = row_p.reshape(1, Ep)
    col2 = col_p.reshape(1, Ep)
    deg2 = jnp.pad(deg[col], (0, pad)).reshape(1, Ep)
    nnzr2 = jnp.pad(nnz[row], (0, pad)).reshape(1, Ep)
    nnzc2 = jnp.pad(nnz[col], (0, pad)).reshape(1, Ep)

    edge_spec = pl.BlockSpec((1, tE), lambda i: (0, i))
    out_shape = (jax.ShapeDtypeStruct((1, Ep), jnp.float32),
                 jax.ShapeDtypeStruct((1, Ep), jnp.int8))
    out_specs = [edge_spec, edge_spec]
    cparams = pltpu.CompilerParams(dimension_semantics=("parallel",),
                                   vmem_limit_bytes=_vmem_limit_bytes())

    if fuse_gather:
        # Nonzero pattern of feat, transposed to (D, N), bf16 (0/1 exact),
        # VMEM-resident for the whole grid (constant block index).
        # NOTE: pipeline_mode=pl.Buffered(1) on this spec would save one resident
        # copy of VMEM; left at the default buffering for lowering robustness.
        maskT = (feat != 0).astype(jnp.bfloat16).T
        kernel = functools.partial(_fused_gather_kernel,
                                   threshold=float(threshold),
                                   allow_singleton=bool(allow_singleton))
        score, mask = pl.pallas_call(
            kernel,
            out_shape=out_shape,
            grid_spec=pltpu.PrefetchScalarGridSpec(
                num_scalar_prefetch=0, grid=grid,
                in_specs=[pl.BlockSpec((D, N), lambda i: (0, 0)),
                          edge_spec, edge_spec, edge_spec, edge_spec, edge_spec],
                out_specs=out_specs),
            compiler_params=cparams,
        )(maskT, row2, col2, nnzr2, nnzc2, deg2)
    else:
        # Streamed fallback for large node tables: gather int8 nonzero masks
        # row-wise (contiguous rows, 4x less HBM than f32 features), then present
        # lane-dense (D, Ep) tiles to the kernel.
        M8 = (feat != 0).astype(jnp.int8)          # (N, D)
        A_T = M8[row_p].T                           # (D, Ep) int8
        B_T = M8[col_p].T                           # (D, Ep) int8
        kernel = functools.partial(_pregathered_kernel,
                                   threshold=float(threshold),
                                   allow_singleton=bool(allow_singleton))
        feat_spec = pl.BlockSpec((D, tE), lambda i: (0, i))
        score, mask = pl.pallas_call(
            kernel,
            out_shape=out_shape,
            grid_spec=pltpu.PrefetchScalarGridSpec(
                num_scalar_prefetch=0, grid=grid,
                in_specs=[feat_spec, feat_spec, edge_spec, edge_spec, edge_spec],
                out_specs=out_specs),
            compiler_params=cparams,
        )(A_T, B_T, nnzr2, nnzc2, deg2)

    return score[0, :E], mask[0, :E].astype(bool)


def _reference(feat, row, col, threshold=0.0, allow_singleton=False):
    A = feat[row]
    B = feat[col]
    inter = jnp.count_nonzero(A * B, axis=1).astype(jnp.float32)
    nnz_a = jnp.count_nonzero(A, axis=1).astype(jnp.float32)
    nnz_b = jnp.count_nonzero(B, axis=1).astype(jnp.float32)
    score = inter / (nnz_a + nnz_b - inter + 1e-7)
    deg = jnp.zeros((feat.shape[0],), jnp.int32).at[col].add(1)
    cond = score <= threshold
    if not allow_singleton:
        cond = jnp.logical_and(cond, deg[col] > 1)
    return score, cond


if __name__ == "__main__":
    key = jax.random.PRNGKey(0)
    k_feat, k_row, k_col = jax.random.split(key, 3)

    N, D, E = 16, 32, 64          # nodes, feature dim, edges
    # Binary-ish node features (typical Jaccard-purification setting).
    feat = (jax.random.uniform(k_feat, (N, D)) > 0.5).astype(jnp.float32)
    row = jax.random.randint(k_row, (E,), 0, N, dtype=jnp.int32)
    col = jax.random.randint(k_col, (E,), 0, N, dtype=jnp.int32)

    threshold = 0.3
    allow_singleton = False

    ref_score, ref_cond = _reference(feat, row, col, threshold, allow_singleton)

    # Fused-gather path (VMEM-resident bf16 mask, gather via one-hot matmul).
    score, remove_mask = jaccard_purification(
        feat, row, col, threshold=threshold, allow_singleton=allow_singleton,
        fuse_gather=True)
    jax.block_until_ready((score, remove_mask))
    np.testing.assert_allclose(np.asarray(score), np.asarray(ref_score),
                               rtol=1e-5, atol=1e-6)
    np.testing.assert_array_equal(np.asarray(remove_mask), np.asarray(ref_cond))

    # Streamed fallback path (used for large node tables).
    score2, mask2 = jaccard_purification(
        feat, row, col, threshold=threshold, allow_singleton=allow_singleton,
        fuse_gather=False)
    jax.block_until_ready((score2, mask2))
    np.testing.assert_allclose(np.asarray(score2), np.asarray(ref_score),
                               rtol=1e-5, atol=1e-6)
    np.testing.assert_array_equal(np.asarray(mask2), np.asarray(ref_cond))

    # Dynamic-shape bookkeeping (torch.where / g.remove_edges) done host-side.
    # TODO(synk): actual DGL graph edge removal (g.remove_edges) has no Pallas equivalent.
    mask_np = np.asarray(remove_mask)
    e_id = np.nonzero(mask_np)[0]
    removed_edges = np.stack([np.asarray(row)[e_id], np.asarray(col)[e_id]], axis=0)
    assert removed_edges.shape[0] == 2

    print("KERNEL_OK")
</pallas_src>

<mosaic_0001>
module attributes {stable_mosaic.version = 11 : i64} {
  func.func @_fused_gather_kernel(%arg0: i32, %arg1: memref<32x16xbf16, #tpu.memory_space<vmem>>, %arg2: memref<1x128xi32, #tpu.memory_space<vmem>>, %arg3: memref<1x128xi32, #tpu.memory_space<vmem>>, %arg4: memref<1x128xf32, #tpu.memory_space<vmem>>, %arg5: memref<1x128xf32, #tpu.memory_space<vmem>>, %arg6: memref<1x128xi32, #tpu.memory_space<vmem>>, %arg7: memref<1x128xf32, #tpu.memory_space<vmem>>, %arg8: memref<1x128xi8, #tpu.memory_space<vmem>>) attributes {dimension_semantics = [#tpu.dimension_semantics<parallel>], iteration_bounds = array<i64: 1>, scalar_prefetch = 0 : i64, scratch_operands = 0 : i64, tpu.core_type = #tpu.core_type<tc>, window_params = [{pipeline_mode = #tpu.pipeline_mode<synchronous>, transform_indices = @transform_0, window_bounds = array<i64: 32, 16>}, {transform_indices = @transform_1, window_bounds = array<i64: 1, 128>}, {transform_indices = @transform_2, window_bounds = array<i64: 1, 128>}, {transform_indices = @transform_3, window_bounds = array<i64: 1, 128>}, {transform_indices = @transform_4, window_bounds = array<i64: 1, 128>}, {transform_indices = @transform_5, window_bounds = array<i64: 1, 128>}, {transform_indices = @transform_6, window_bounds = array<i64: 1, 128>}, {transform_indices = @transform_7, window_bounds = array<i64: 1, 128>}]} {
    %c0 = arith.constant 0 : index
    %c0_0 = arith.constant 0 : index
    %0 = vector.load %arg1[%c0, %c0_0] : memref<32x16xbf16, #tpu.memory_space<vmem>>, vector<32x16xbf16>
    %1 = tpu.iota {dimensions = array<i32: 0>} : vector<16x1xi32>
    %c0_1 = arith.constant 0 : index
    %c0_2 = arith.constant 0 : index
    %2 = vector.load %arg2[%c0_1, %c0_2] : memref<1x128xi32, #tpu.memory_space<vmem>>, vector<1x128xi32>
    %c0_3 = arith.constant 0 : index
    %c0_4 = arith.constant 0 : index
    %3 = vector.load %arg3[%c0_3, %c0_4] : memref<1x128xi32, #tpu.memory_space<vmem>>, vector<1x128xi32>
    %4 = tpu.concatenate %2, %3 in 1 : vector<1x128xi32>, vector<1x128xi32> -> vector<1x256xi32>
    %5 = vector.broadcast %1 : vector<16x1xi32> to vector<16x256xi32>
    %6 = vector.broadcast %4 : vector<1x256xi32> to vector<16x256xi32>
    %7 = arith.cmpi eq, %5, %6 : vector<16x256xi32>
    %8 = arith.extui %7 : vector<16x256xi1> to vector<16x256xi32>
    %9 = arith.sitofp %8 : vector<16x256xi32> to vector<16x256xf32>
    %10 = arith.truncf %9 : vector<16x256xf32> to vector<16x256xbf16>
    %cst = arith.constant dense<0.000000e+00> : vector<32x256xf32>
    %11 = tpu.matmul %0, %10, %cst {dimension_numbers = #tpu.dot_dimension_numbers<[1], [0], [0], [1], [0, 0, 1, 1], [], []>} : vector<32x16xbf16>, vector<16x256xbf16>, vector<32x256xf32> -> vector<32x256xf32>
    %12 = vector.extract_strided_slice %11 {offsets = [0, 0], sizes = [32, 128], strides = [1, 1]} : vector<32x256xf32> to vector<32x128xf32>
    %13 = vector.extract_strided_slice %11 {offsets = [0, 128], sizes = [32, 128], strides = [1, 1]} : vector<32x256xf32> to vector<32x128xf32>
    %14 = arith.mulf %12, %13 : vector<32x128xf32>
    %cst_5 = arith.constant dense<0.000000e+00> : vector<128xf32>
    %15 = vector.multi_reduction <add>, %14, %cst_5 [0] : vector<32x128xf32> to vector<128xf32>
    %16 = vector.shape_cast %15 : vector<128xf32> to vector<1x128xf32>
    %c0_6 = arith.constant 0 : index
    %c0_7 = arith.constant 0 : index
    %17 = vector.load %arg4[%c0_6, %c0_7] : memref<1x128xf32, #tpu.memory_space<vmem>>, vector<1x128xf32>
    %c0_8 = arith.constant 0 : index
    %c0_9 = arith.constant 0 : index
    %18 = vector.load %arg5[%c0_8, %c0_9] : memref<1x128xf32, #tpu.memory_space<vmem>>, vector<1x128xf32>
    %c0_10 = arith.constant 0 : index
    %c0_11 = arith.constant 0 : index
    %19 = vector.load %arg6[%c0_10, %c0_11] : memref<1x128xi32, #tpu.memory_space<vmem>>, vector<1x128xi32>
    %20 = arith.addf %17, %18 : vector<1x128xf32>
    %21 = arith.subf %20, %16 : vector<1x128xf32>
    %cst_12 = arith.constant 1.000000e-07 : f32
    %22 = vector.broadcast %cst_12 : f32 to vector<1x128xf32>
    %23 = arith.addf %21, %22 : vector<1x128xf32>
    %24 = arith.divf %16, %23 : vector<1x128xf32>
    %cst_13 = arith.constant 3.000000e-01 : f32
    %25 = vector.broadcast %cst_13 : f32 to vector<1x128xf32>
    %26 = arith.cmpf ole, %24, %25 : vector<1x128xf32>
    %c1_i32 = arith.constant 1 : i32
    %27 = vector.broadcast %c1_i32 : i32 to vector<1x128xi32>
    %28 = arith.cmpi sgt, %19, %27 : vector<1x128xi32>
    %29 = arith.andi %26, %28 : vector<1x128xi1>
    %c0_14 = arith.constant 0 : index
    %c0_15 = arith.constant 0 : index
    %30 = vector.load %arg7[%c0_14, %c0_15] : memref<1x128xf32, #tpu.memory_space<vmem>>, vector<1x128xf32>
    tpu.vector_store %arg7[%c0_14, %c0_15], %24 {strides = array<i32>} : memref<1x128xf32, #tpu.memory_space<vmem>>, vector<1x128xf32>,
    %31 = arith.extui %29 : vector<1x128xi1> to vector<1x128xi8>
    %c0_16 = arith.constant 0 : index
    %c0_17 = arith.constant 0 : index
    %32 = vector.load %arg8[%c0_16, %c0_17] : memref<1x128xi8, #tpu.memory_space<vmem>>, vector<1x128xi8>
    tpu.vector_store %arg8[%c0_16, %c0_17], %31 {strides = array<i32>} : memref<1x128xi8, #tpu.memory_space<vmem>>, vector<1x128xi8>,
    return
  }
  func.func @transform_0(%arg0: i32) -> (i32, i32) {
    %c0_i32 = arith.constant 0 : i32
    %c0_i32_0 = arith.constant 0 : i32
    %c0_i32_1 = arith.constant 0 : i32
    return %c0_i32, %c0_i32_0 : i32, i32
  }
  func.func @transform_1(%arg0: i32) -> (i32, i32) {
    %c0_i32 = arith.constant 0 : i32
    %c0_i32_0 = arith.constant 0 : i32
    return %c0_i32, %arg0 : i32, i32
  }
  func.func @transform_2(%arg0: i32) -> (i32, i32) {
    %c0_i32 = arith.constant 0 : i32
    %c0_i32_0 = arith.constant 0 : i32
    return %c0_i32, %arg0 : i32, i32
  }
  func.func @transform_3(%arg0: i32) -> (i32, i32) {
    %c0_i32 = arith.constant 0 : i32
    %c0_i32_0 = arith.constant 0 : i32
    return %c0_i32, %arg0 : i32, i32
  }
  func.func @transform_4(%arg0: i32) -> (i32, i32) {
    %c0_i32 = arith.constant 0 : i32
    %c0_i32_0 = arith.constant 0 : i32
    return %c0_i32, %arg0 : i32, i32
  }
  func.func @transform_5(%arg0: i32) -> (i32, i32) {
    %c0_i32 = arith.constant 0 : i32
    %c0_i32_0 = arith.constant 0 : i32
    return %c0_i32, %arg0 : i32, i32
  }
  func.func @transform_6(%arg0: i32) -> (i32, i32) {
    %c0_i32 = arith.constant 0 : i32
    %c0_i32_0 = arith.constant 0 : i32
    return %c0_i32, %arg0 : i32, i32
  }
  func.func @transform_7(%arg0: i32) -> (i32, i32) {
    %c0_i32 = arith.constant 0 : i32
    %c0_i32_0 = arith.constant 0 : i32
    return %c0_i32, %arg0 : i32, i32
  }
}

</mosaic_0001>

<bundles_post_ra>
// kernel: tpu_custom_call.1
= control target key start
LH: loop header
LB: loop body
LE: loop exit
PB: predicated region body
PF: predicated region fallthrough
CT: control target
= control target key end

     0   :  { %13 = vsyncpa [#allocation3], 0  ;;  %v34_v0 = vlaneseq  ;;  %v265_v4 = vmov 0   ;;  %s370_s0 = inlined_call_operand.vmem [shape: bf16[32,16], index: 0, kind: input, shape index: {}]   ;;  %s371_s1 = inlined_call_operand.vmem [shape: s32[1,128], index: 1, kind: input, shape index: {}]   ;;  %s372_s2 = inlined_call_operand.vmem [shape: s32[1,128], index: 2, kind: input, shape index: {}]   ;;  %s373_s3 = inlined_call_operand.vmem [shape: f32[1,128], index: 3, kind: input, shape index: {}]   ;;  %s374_s4 = inlined_call_operand.vmem [shape: f32[1,128], index: 4, kind: input, shape index: {}]   ;;  %s375_s5 = inlined_call_operand.vmem [shape: s32[1,128], index: 5, kind: input, shape index: {}]   ;;  %s376_s6 = inlined_call_operand.hbm [shape: f32[1,128], index: 6, kind: output, shape index: {0}]   ;;  %s377_s7 = inlined_call_operand.hbm [shape: s8[1,128], index: 7, kind: output, shape index: {1}]  }
   0x1   :  { %v194_v1 = vld [vmem:[%s372_s2] ss:$0 sm:$0xff]  ;;  %110 = vmatprep.mubr.bf16.mxu0 %v265_v4  ;;  %120 = vmatprep.mubr.bf16.mxu1 %v265_v4 }
   0x2   :  { %v193_v2 = vld [vmem:[%s371_s1] ss:$0 sm:$0xff]  ;;  %v35_v3 = vshrl.u32 %v34_v0, 7 }
   0x3   :  { %14 = vsyncpa [#allocation5], 0  ;;  %v266_v6 = vmov 1.0|1.0   ;;  %v213_v7 = vld [vmem:[%s370_s0] sm:$0xff]   ;;  %v214_v8 = vld [vmem:[%s370_s0 + $0x8] sm:$0xff]  }
   0x4   :  { %v36_v5 = vadd.s32 8, %v35_v3  ;;  %vm48_vm0 = vcmp.eq.s32.totalorder %v35_v3, %v194_v1  ;;  %vm47_vm1 = vcmp.eq.s32.totalorder %v35_v3, %v193_v2  ;;  %vm71_vm6 = vcmask 130048   ;;  %v144_v27 = vld [vmem:[%s373_s3] sm:$0x1]  ;;  %s267_s12 = smov [#allocation2]   ;;  %s268_s3 = smov [#allocation4]  }
   0x5   :  { %v145_v28 = vld [vmem:[%s374_s4] sm:$0x1]  ;;  %s171_s13 = sshll.u32 %s267_s12, 4  ;;  %vm159_vm7 = vcmask 1040384   ;;  %vm160_vm8 = vsmask.f32 0  ;;  %s172_s13 = int_to_ptr.vmem [resolvable:$true] %s171_s13 }
   0x6   :  { %vm50_vm2 = vcmp.eq.s32.totalorder %v36_v5, %v194_v1  ;;  %vm49_vm3 = vcmp.eq.s32.totalorder %v36_v5, %v193_v2  ;;  %v147_v31 = vadd.f32 %v145_v28, %v144_v27  ;;  %v146_v35 = vld [vmem:[%s375_s5] sm:$0x1]  ;;  %vm332_vm11 = vmand %vm159_vm7, %vm160_vm8  ;;  %s181_s4 = sshll.u32 %s268_s3, 4  ;;  %s217_s5 = scalar_lea.vmem %s172_s13, 16  ;;  %s182_s4 = int_to_ptr.vmem [resolvable:$true] %s181_s4 }
   0x7   :  { %vm201_vm4 = vmpackc.low %vm50_vm2, %vm48_vm0  ;;  %vm153_vm9 = vcmp.gt.s32.totalorder %v146_v35, 1  ;;  %p218_p0 = scmp.ne.s32.totalorder %s172_s13, %s217_s5  ;;  %s221_s14 = scalar_lea.vmem %s172_s13, 32 }
   0x8   :  { %202 = vmatprep.subr.msk.bf16.mxu0 %vm201_vm4, %v266_v6  ;;  %207 = vmatprep.subr.msk.bf16.mxu1 %vm201_vm4, %v266_v6  ;;  %vm203_vm5 = vmpackc.low %vm49_vm3, %vm47_vm1  ;;  %p222_p1 = scmp.lt.s32.totalorder %s172_s13, %s172_s13  ;;  %p223_p2 = scmp.lt.s32.totalorder %s221_s14, %s217_s5 }
   0x9   :  { %204 = vmatpush1.bf16.msk.msra.mxu0 %vm203_vm5, %v266_v6  ;;  %208 = vmatpush1.bf16.msk.msra.mxu1 %vm203_vm5, %v266_v6 }
   0xa   :  { %p224_p3 = por %p223_p2, %p222_p1 }
   0xc   :  { %205 = vmatmul.mubr.msk.bf16.vlgmr.msra.gmra.mrb[0].mxu0 %vm71_vm6, %v213_v7  ;;  %206 = vmatmul.mubr.msk.bf16.vlgmr.msra.gmra.mrb[0].mxu1 %vm71_vm6, %v214_v8  ;;  %p225_p4 = pnand %p224_p3, %p218_p0 }
  0xdf   :  { %v112_v9 = vpop.f32.mrb[0].mxu0  ;;  %v122_v10 = vpop.f32.mrb[0].mxu1 }
  0xe0   :  { %v114_v11 = vpop.f32.mrb[1].mxu0  ;;  %v124_v12 = vpop.f32.mrb[1].mxu1 }
  0xe1   :  { %v131_v13 = vmul.f32 %v114_v11, %v112_v9  ;;  %v116_v14 = vpop.f32.mrb[2].mxu0  ;;  %v133_v15 = vmul.f32 %v124_v12, %v122_v10  ;;  %v126_v16 = vpop.f32.mrb[2].mxu1 }
  0xe2   :  { %v118_v17 = vpop.f32.mrb[3].mxu0  ;;  %v128_v18 = vpop.f32.mrb[3].mxu1 }
  0xe3   :  { %v132_v19 = vmul.f32 %v118_v17, %v116_v14  ;;  %v134_v20 = vmul.f32 %v128_v18, %v126_v16 }
  0xe5   :  { %v135_v21 = vadd.f32 %v132_v19, %v131_v13 }
  0xe7   :  { %v136_v22 = vadd.f32 %v135_v21, %v133_v15 }
  0xe9   :  { %v137_v23 = vadd.f32 %v136_v22, %v134_v20 }
  0xeb   :  { %v138_v24 = vrot.slane %v137_v23, 4 }
  0xed   :  { %v139_v25 = vadd.f32 %v138_v24, %v137_v23 }
  0xef   :  { %v140_v26 = vrot.slane %v139_v25, 2 }
  0xf1   :  { %v141_v29 = vadd.f32 %v140_v26, %v139_v25 }
  0xf3   :  { %v142_v30 = vrot.slane %v141_v29, 1 }
  0xf5   :  { %v143_v32 = vadd.f32 %v142_v30, %v141_v29 }
  0xf7   :  { %v148_v33 = vsub.f32 %v147_v31, %v143_v32 }
  0xf9   :  { %v149_v34 = vadd.f32 1e-07, %v148_v33 }
  0xfb   :  { %215 = vrcp.f32 %v149_v34 }
 0x105   :  { %v216_v36 = vpop.eup %215 }
 0x106   :  { %v151_v37 = vmul.f32 %v216_v36, %v143_v32 }
 0x108   :  { %vm152_vm10 = vcmp.le.f32.partialorder %v151_v37, 0.3  ;;  %155 = vst [vmem:[#allocation2] sm:$0x1] %v151_v37 }
 0x109   :  { %vm336_vm12 = vmand %vm152_vm10, %vm153_vm9 }
 0x10a   :  { %228 = shalt.err (!%p225_p4)
}
 0x10b   :  { %s229_s17 = scalar_lea.hbm %s376_s6, 16 }
 0x10c   :  { %p230_p5 = scmp.ne.s32.totalorder %s376_s6, %s229_s17  ;;  %p233_p6 = scmp.lt.u32.totalorder %s229_s17, %s376_s6 }
 0x10e   :  { %p235_p7 = pnand %p233_p6, %p230_p5 }
 0x110   :  { %238 = shalt.err (!%p235_p7)
}
 0x111   :  { %174 = dma.vmem_to_hbm [thread:$0]  %s172_s13, 16, %s376_s6, [#allocation3]   ;;  %vm156_vm13 = vmpackc.low %vm336_vm12, %vm336_vm12  ;;  %v162_v40 = vld [vmem:[#allocation4] sm:$0x1] }
 0x112   :  { %vm157_vm14 = vmpackc.even %vm156_vm13, %vm156_vm13  ;;  %s239_s24 = scalar_lea.vmem %s182_s4, 16  ;;  %s243_s25 = scalar_lea.vmem %s182_s4, 32 }
 0x113   :  { %v158_v41 = vsel %vm157_vm14, 16843009, %v265_v4  ;;  %p240_p8 = scmp.ne.s32.totalorder %s182_s4, %s239_s24  ;;  %p244_p9 = scmp.lt.s32.totalorder %s182_s4, %s182_s4 }
 0x114   :  { %v163_v42 = vsel %vm332_vm11, %v158_v41, %v162_v40  ;;  %p245_p10 = scmp.lt.s32.totalorder %s243_s25, %s239_s24 }
 0x115   :  { %164 = vst [vmem:[#allocation4] sm:$0x1] %v163_v42 }
 0x116   :  { %p246_p11 = por %p245_p10, %p244_p9 }
 0x118   :  { %p247_p12 = pnand %p246_p11, %p240_p8 }
 0x11a   :  { %250 = shalt.err (!%p247_p12)
}
 0x11b   :  { %s251_s27 = scalar_lea.hbm %s377_s7, 16 }
 0x11c   :  { %p252_p13 = scmp.ne.s32.totalorder %s377_s7, %s251_s27  ;;  %p255_p0 = scmp.lt.u32.totalorder %s251_s27, %s377_s7 }
 0x11e   :  { %p257_p1 = pnand %p255_p0, %p252_p13 }
 0x120   :  { %260 = shalt.err (!%p257_p1)
}
 0x121   :  { %184 = dma.vmem_to_hbm [thread:$0]  %s182_s4, 16, %s377_s7, [#allocation5]  }
 0x122   :  { %261 = dma.done.wait [#allocation3], 16  }
 0x123   :  { %262 = vsyncadd [#allocation3], 4294967280 }
 0x124   :  { %263 = dma.done.wait [#allocation5], 16  }
 0x125   :  { %264 = vsyncadd [#allocation5], 4294967280 }
 0x126   :  { %191 = vsyncpa [#allocation3], 1 }
 0x127   :  { %192 = vsyncpa [#allocation5], 1 }

</bundles_post_ra>
